<compile_context>
chip_gen: v6e
topology: v6e:2x2x1
jax: 0.10.0
libtpu: 0.0.40
codegen_flags: <defaults>
</compile_context>

<pallas_src>
import jax
import jax.numpy as jnp
from jax.experimental import pallas as pl
from jax.experimental.pallas import tpu as pltpu


def _round_up(v, m):
    return ((v + m - 1) // m) * m


def _round_down(v, m):
    return (v // m) * m


def _largest_divisor(n, cap, mult):
    """Largest divisor of n that is <= cap and a multiple of mult (0 if none)."""
    best, d = 0, 1
    while d * d <= n:
        if n % d == 0:
            for v in (d, n // d):
                if v <= cap and v % mult == 0 and v > best:
                    best = v
        d += 1
    return best


def _vmem_budget():
    """(in-kernel working-set budget, scoped vmem limit) in bytes, per generation."""
    phys = 64 << 20                      # conservative default (v7x per-core VMEM)
    try:
        info = pltpu.get_tpu_info()
        cap = getattr(info, "vmem_capacity_bytes", None)
        if cap:
            phys = int(cap)
    except Exception:
        pass
    budget = min(24 << 20, phys // 3)    # double-buffered inputs + f32 temporaries
    limit = min(phys // 2, 64 << 20)     # lift v5e's 16 MiB default, safe on v7x
    return budget, limit


def _make_kernel(*, tile, c, n_valid, resident, n_target, reps, t_blocks):
    """Per-tile partial loss: out[0, :] = sum_rows(target * (logsumexp(x) - x))."""
    needs_mask = (n_valid % tile) != 0

    def kernel(x_ref, t_ref, out_ref):
        i = pl.program_id(0)
        x = x_ref[...].astype(jnp.float32)                           # (tile, C)
        m = jnp.max(x, axis=-1, keepdims=True)
        lse = m + jnp.log(jnp.sum(jnp.exp(x - m), axis=-1, keepdims=True))
        w = lse - x                                                   # -log_softmax

        if needs_mask:
            rows = i * tile + jax.lax.broadcasted_iota(jnp.int32, (tile, 1), 0)
            valid = rows < n_valid

        if resident:
            # The whole (N, C) target lives in VMEM (constant index_map -> one DMA).
            if needs_mask:
                w = jnp.where(valid, w, 0.0)
            t = t_ref[...]                                            # (N, C)
            if reps > 1:
                # tile == reps * N: fold the repeats of w, then one (N, C) multiply.
                w = jnp.reshape(w, (reps, n_target, c)).sum(axis=0)   # (N, C)
            elif t_blocks > 1:
                # tile divides N: this tile uses one contiguous target slice.
                off = pl.multiple_of((i % t_blocks) * tile, 8)
                t = t_ref[pl.ds(off, tile), :]                        # (tile, C)
            contrib = t * w                                           # promotes to f32
        else:
            contrib = t_ref[...] * w                                  # (tile, C)
            if needs_mask:
                contrib = jnp.where(valid, contrib, 0.0)

        # Reduce rows (sublanes), keep classes (lanes) -> lane-dense (1, C) store.
        out_ref[...] = jnp.sum(contrib, axis=0, keepdims=True)

    return kernel


def token_label_soft_target_cross_entropy(x, target, *, resident_target_bytes=2 << 20):
    """x: (N_rep, C) logits; target: (N, C) soft labels or (N, C, 2) with the
    soft label in channel 1.  Returns the scalar mean loss (float32)."""
    if target.ndim == 3 and target.shape[-1] == 2:
        # Channel 0 (hard label) is unused by the loss.
        # TODO(synk): accept a (2, N, C) target layout upstream (or fold the channel
        # select into the target BlockSpec) to avoid this strided host-side copy.
        target = target[:, :, 1]
    assert x.ndim == 2 and target.ndim == 2 and target.shape[1] == x.shape[1]

    n_rep, c = int(x.shape[0]), int(x.shape[1])
    n = int(target.shape[0])
    x_b = x.dtype.itemsize
    t_b = target.dtype.itemsize
    g = 16 if min(x_b, t_b) < 4 else 8          # deeper sublane granule for bf16/int8

    budget, vmem_limit = _vmem_budget()

    # ---- how the (possibly repeated) target reaches the kernel -------------
    #   "same"      target block tiled exactly like x
    #   "wrap"      (tile, C) blocks with a wrapping index_map (tile | N)
    #   "resident"  full (N, C) target kept in VMEM, sliced / folded in-kernel
    mode = "same"
    if n != n_rep:
        if n % 8 == 0:
            small = n * c * t_b <= min(resident_target_bytes, budget // 4)
            mode = "resident" if small else "wrap"
        else:
            # Rare sublane-misaligned N: materialize the repeat once (gather).
            target = jnp.take(target, jnp.arange(n_rep, dtype=jnp.int32) % n, axis=0)
            n = n_rep

    # ---- VMEM-aware row tile ------------------------------------------------
    reserved = 2 * n * c * t_b if mode == "resident" else 0
    per_row = c * (2 * x_b + (0 if mode == "resident" else 2 * t_b) + 5 * 4)
    cap_rows = max(8, (budget - reserved) // per_row)

    # >=8 grid steps when the input allows it, but never below ~256 rows.
    want = max(256, _round_up(-(-n_rep // 8), 8))
    tile = min(cap_rows, 1024, want)
    if n_rep >= 8:
        tile = max(8, _round_down(min(tile, n_rep), 8))
        if g == 16 and tile >= 16:
            tile = _round_down(tile, 16)
    else:
        tile = n_rep                             # tiny input: block == full extent

    reps, t_blocks = 1, 1
    if mode in ("resident", "wrap"):
        if mode == "resident" and tile >= n:
            tile = _round_down(tile, n)          # multiple of N: fold repeats in-kernel
            reps = tile // n
        else:
            d = (_largest_divisor(n, tile, 16 if g == 16 else 8)
                 or _largest_divisor(n, tile, 8))
            if d >= min(256, tile):
                tile = d
                t_blocks = n // tile
            else:
                # A tiny wrap tile loses more to per-step overhead than the
                # materialized repeat costs in extra HBM traffic.
                target = jnp.take(target, jnp.arange(n_rep, dtype=jnp.int32) % n, axis=0)
                n = n_rep
                mode = "same"

    num_tiles = int(pl.cdiv(n_rep, tile))
    kernel = _make_kernel(tile=tile, c=c, n_valid=n_rep,
                          resident=(mode == "resident"),
                          n_target=n, reps=reps, t_blocks=t_blocks)

    x_spec = pl.BlockSpec((tile, c), lambda i: (i, 0))
    if mode == "resident":
        t_spec = pl.BlockSpec((n, c), lambda i: (0, 0))      # loaded once, stays in VMEM
    elif mode == "wrap":
        nb = t_blocks
        t_spec = pl.BlockSpec((tile, c), lambda i: (i % nb, 0))
    else:
        t_spec = pl.BlockSpec((tile, c), lambda i: (i, 0))

    partials = pl.pallas_call(
        kernel,
        out_shape=jax.ShapeDtypeStruct((num_tiles, 1, c), jnp.float32),
        grid_spec=pltpu.PrefetchScalarGridSpec(
            num_scalar_prefetch=0,
            grid=(num_tiles,),
            in_specs=[x_spec, t_spec],
            out_specs=pl.BlockSpec((None, 1, c), lambda i: (i, 0, 0)),
        ),
        compiler_params=pltpu.CompilerParams(
            dimension_semantics=("parallel",),
            vmem_limit_bytes=int(vmem_limit),
        ),
    )(x, target)

    # Tiny (num_tiles x C) final reduction + mean over the true rows.
    return jnp.sum(partials) / jnp.float32(n_rep)


def _reference(x, target):
    """Pure-JAX mirror of the PyTorch module's forward."""
    n_rep = x.shape[0]
    n = target.shape[0]
    if n != n_rep:
        ratio = n_rep // n
        target = jnp.concatenate([target] * ratio, axis=0)
        if ratio * n < n_rep:
            target = jnp.concatenate([target, target[: n_rep - ratio * n]], axis=0)
    if target.ndim == 3 and target.shape[-1] == 2:
        target = target[:, :, 1]
    logp = jax.nn.log_softmax(x.astype(jnp.float32), axis=-1)
    return jnp.mean(jnp.sum(-target.astype(jnp.float32) * logp, axis=-1))


if __name__ == "__main__":
    key = jax.random.PRNGKey(0)
    ks = jax.random.split(key, 12)

    def soft(k, n, c, dtype=jnp.float32):
        s = jax.nn.softmax(jax.random.normal(k, (n, c), dtype=jnp.float32), axis=-1)
        return s.astype(dtype)

    cases = []

    # 1) (N, C, 2) target (hard + soft channels), N == N_rep, single tile.
    x1 = jax.random.normal(ks[0], (16, 128), dtype=jnp.float32)
    s1 = soft(ks[1], 16, 128)
    h1 = jnp.zeros_like(s1).at[jnp.arange(16), jnp.argmax(s1, axis=-1)].set(1.0)
    cases.append((x1, jnp.stack([h1, s1], axis=-1), {}, 1e-4))

    # 2) repeated target (ratio 3), resident target folded in-kernel (reps > 1).
    cases.append((jax.random.normal(ks[2], (24, 128), jnp.float32),
                  soft(ks[3], 8, 128), {}, 1e-4))

    # 3) ratio*N < N_rep ("extra" rows) + partial last tile (in-kernel masking).
    cases.append((jax.random.normal(ks[4], (20, 128), jnp.float32),
                  soft(ks[5], 8, 128), {}, 1e-4))

    # 4) resident target sliced per tile (tile < N), multi-step parallel grid.
    cases.append((jax.random.normal(ks[6], (1024, 128), jnp.float32),
                  soft(ks[7], 512, 128), {}, 1e-4))

    # 5) same shapes, forcing the wrapping-index_map (streamed target) path.
    cases.append((jax.random.normal(ks[6], (1024, 128), jnp.float32),
                  soft(ks[7], 512, 128), {"resident_target_bytes": 0}, 1e-4))

    # 6) sublane-misaligned N (gather fallback) + masked last tile.
    cases.append((jax.random.normal(ks[8], (20, 128), jnp.float32),
                  soft(ks[9], 6, 128), {}, 1e-4))

    # 7) bf16 inputs (bandwidth-friendly path); kernel math stays f32.
    cases.append((jax.random.normal(ks[10], (32, 128), jnp.float32).astype(jnp.bfloat16),
                  soft(ks[11], 16, 128, jnp.bfloat16), {}, 1e-3))

    ok = True
    for x, t, kw, tol in cases:
        got = jax.block_until_ready(token_label_soft_target_cross_entropy(x, t, **kw))
        want = jax.block_until_ready(_reference(x, t))
        if not jnp.allclose(got, want, rtol=tol, atol=tol):
            ok = False
            print("MISMATCH", x.shape, t.shape, kw, float(got), float(want))

    if ok:
        print("KERNEL_OK")
</pallas_src>

<mosaic_0001>
module attributes {stable_mosaic.version = 11 : i64} {
  func.func @kernel(%arg0: i32, %arg1: memref<16x128xf32, #tpu.memory_space<vmem>>, %arg2: memref<16x128xf32, #tpu.memory_space<vmem>>, %arg3: memref<1x1x128xf32, #tpu.memory_space<vmem>>) attributes {dimension_semantics = [#tpu.dimension_semantics<parallel>], iteration_bounds = array<i64: 1>, scalar_prefetch = 0 : i64, scratch_operands = 0 : i64, tpu.core_type = #tpu.core_type<tc>, window_params = [{transform_indices = @transform_0, window_bounds = array<i64: 16, 128>}, {transform_indices = @transform_1, window_bounds = array<i64: 16, 128>}, {transform_indices = @transform_2, window_bounds = array<i64: 1, 1, 128>}]} {
    %c0 = arith.constant 0 : index
    %c0_0 = arith.constant 0 : index
    %0 = vector.load %arg1[%c0, %c0_0] : memref<16x128xf32, #tpu.memory_space<vmem>>, vector<16x128xf32>
    %cst = arith.constant dense<0xFF800000> : vector<16xf32>
    %1 = vector.multi_reduction <maximumf>, %0, %cst [1] : vector<16x128xf32> to vector<16xf32>
    %2 = vector.shape_cast %1 : vector<16xf32> to vector<16x1xf32>
    %3 = vector.broadcast %2 : vector<16x1xf32> to vector<16x128xf32>
    %4 = arith.subf %0, %3 : vector<16x128xf32>
    %5 = math.exp %4 : vector<16x128xf32>
    %cst_1 = arith.constant dense<0.000000e+00> : vector<16xf32>
    %6 = vector.multi_reduction <add>, %5, %cst_1 [1] : vector<16x128xf32> to vector<16xf32>
    %7 = vector.shape_cast %6 : vector<16xf32> to vector<16x1xf32>
    %8 = math.log %7 : vector<16x1xf32>
    %9 = arith.addf %2, %8 : vector<16x1xf32>
    %10 = vector.broadcast %9 : vector<16x1xf32> to vector<16x128xf32>
    %11 = arith.subf %10, %0 : vector<16x128xf32>
    %c0_2 = arith.constant 0 : index
    %c0_3 = arith.constant 0 : index
    %12 = vector.load %arg2[%c0_2, %c0_3] : memref<16x128xf32, #tpu.memory_space<vmem>>, vector<16x128xf32>
    %13 = arith.mulf %12, %11 : vector<16x128xf32>
    %cst_4 = arith.constant dense<0.000000e+00> : vector<128xf32>
    %14 = vector.multi_reduction <add>, %13, %cst_4 [0] : vector<16x128xf32> to vector<128xf32>
    %15 = vector.shape_cast %14 : vector<128xf32> to vector<1x128xf32>
    %c0_5 = arith.constant 0 : index
    %c0_6 = arith.constant 0 : index
    %c0_7 = arith.constant 0 : index
    %16 = vector.load %arg3[%c0_5, %c0_6, %c0_7] : memref<1x1x128xf32, #tpu.memory_space<vmem>>, vector<1x1x128xf32>
    %17 = vector.shape_cast %16 : vector<1x1x128xf32> to vector<1x128xf32>
    %18 = vector.shape_cast %15 : vector<1x128xf32> to vector<1x1x128xf32>
    tpu.vector_store %arg3[%c0_5, %c0_6, %c0_7], %18 {strides = array<i32>} : memref<1x1x128xf32, #tpu.memory_space<vmem>>, vector<1x1x128xf32>,
    return
  }
  func.func @transform_0(%arg0: i32) -> (i32, i32) {
    %c0_i32 = arith.constant 0 : i32
    %c0_i32_0 = arith.constant 0 : i32
    return %arg0, %c0_i32 : i32, i32
  }
  func.func @transform_1(%arg0: i32) -> (i32, i32) {
    %c0_i32 = arith.constant 0 : i32
    %c0_i32_0 = arith.constant 0 : i32
    return %arg0, %c0_i32 : i32, i32
  }
  func.func @transform_2(%arg0: i32) -> (i32, i32, i32) {
    %c0_i32 = arith.constant 0 : i32
    %c0_i32_0 = arith.constant 0 : i32
    %c0_i32_1 = arith.constant 0 : i32
    return %arg0, %c0_i32, %c0_i32_0 : i32, i32, i32
  }
}

</mosaic_0001>

<bundles_post_ra>
// kernel: tpu_custom_call.1
= control target key start
LH: loop header
LB: loop body
LE: loop exit
PB: predicated region body
PF: predicated region fallthrough
CT: control target
= control target key end

     0   :  { %7 = vsyncpa [#allocation3], 0  ;;  %s200_s0 = inlined_call_operand.hbm [shape: f32[16,128], index: 0, kind: input, shape index: {}]   ;;  %s201_s1 = inlined_call_operand.hbm [shape: f32[16,128], index: 1, kind: input, shape index: {}]   ;;  %s202_s2 = inlined_call_operand.hbm [shape: f32[1,1,128], index: 2, kind: output, shape index: {}]  }
   0x1   :  { %8 = vsyncpa [#allocation6], 0 }
   0x2   :  { %9 = vsyncpa [#allocation4], 0  ;;  %s171_s9 = smov [#allocation2]  }
   0x3   :  { %s15_s10 = sshll.u32 %s171_s9, 4  ;;  %s16_s10 = int_to_ptr.vmem [resolvable:$true] %s15_s10 }
   0x4   :  { %s113_s11 = scalar_lea.vmem %s16_s10, 256  ;;  %p118_p1 = scmp.lt.s32.totalorder %s16_s10, %s16_s10 }
   0x5   :  { %p114_p0 = scmp.ne.s32.totalorder %s16_s10, %s113_s11  ;;  %p119_p2 = scmp.lt.s32.totalorder %s113_s11, %s113_s11 }
   0x7   :  { %p120_p3 = por %p119_p2, %p118_p1 }
   0x9   :  { %p121_p4 = pnand %p120_p3, %p114_p0 }
   0xb   :  { %124 = shalt.err (!%p121_p4)
}
   0xc   :  { %s172_s12 = smov 128   ;;  %s173_s13 = smov 8  }
   0xd   :  { %21 = dma.hbm_to_vmem [thread:$0]  %s200_s0, 256, %s16_s10, [#allocation3], %s172_s12, %s172_s12, %s173_s13  }
   0xe   :  { %s174_s16 = smov [#allocation5]  }
   0xf   :  { %s27_s17 = sshll.u32 %s174_s16, 4  ;;  %s28_s17 = int_to_ptr.vmem [resolvable:$true] %s27_s17 }
  0x10   :  { %s133_s18 = scalar_lea.vmem %s28_s17, 256  ;;  %p138_p6 = scmp.lt.s32.totalorder %s28_s17, %s28_s17 }
  0x11   :  { %p134_p5 = scmp.ne.s32.totalorder %s28_s17, %s133_s18  ;;  %p139_p7 = scmp.lt.s32.totalorder %s133_s18, %s133_s18 }
  0x13   :  { %p140_p8 = por %p139_p7, %p138_p6 }
  0x15   :  { %p141_p9 = pnand %p140_p8, %p134_p5 }
  0x17   :  { %144 = shalt.err (!%p141_p9)
}
  0x18   :  { %33 = dma.hbm_to_vmem [thread:$0]  %s201_s1, 256, %s28_s17, [#allocation6], %s172_s12, %s172_s12, %s173_s13  }
  0x19   :  { %165 = dma.done.wait [#allocation3], 256  }
  0x1a   :  { %166 = vsyncadd [#allocation3], 4294967040 }
  0x1b   :  { %167 = dma.done.wait [#allocation6], 256  }
  0x1c   :  { %168 = vsyncadd [#allocation6], 4294967040  ;;  %v40_v0 = vld [vmem:[#allocation2] sm:$0xff]  ;;  %v41_v1 = vld [vmem:[#allocation2 + $0x8] sm:$0xff]  ;;  %s175_s0 = smov [#allocation7]  }
  0x1d   :  { %42 = vmax.xlane.f32.xlu0 %v40_v0  ;;  %v64_v19 = vld [vmem:[#allocation5] sm:$0xff]  ;;  %v65_v20 = vld [vmem:[#allocation5 + $0x8] sm:$0xff]  ;;  %s82_s1 = sshll.u32 %s175_s0, 4  ;;  %s83_s1 = int_to_ptr.vmem [resolvable:$true] %s82_s1 }
  0x1e   :  { %s145_s21 = scalar_lea.vmem %s83_s1, 16  ;;  %s149_s22 = scalar_lea.vmem %s83_s1, 32 }
  0x1f   :  { %p146_p10 = scmp.ne.s32.totalorder %s83_s1, %s145_s21  ;;  %p150_p11 = scmp.lt.s32.totalorder %s83_s1, %s83_s1 }
  0x20   :  { %p151_p12 = scmp.lt.s32.totalorder %s149_s22, %s145_s21 }
  0x21   :  { %44 = vmax.xlane.f32.xlu0 %v41_v1 }
  0x22   :  { %p152_p13 = por %p151_p12, %p150_p11 }
  0x24   :  { %p153_p0 = pnand %p152_p13, %p146_p10 }
  0xa6   :  { %v43_v2 = vpop.xlane.xlu0 %42 }
  0xa7   :  { %v46_v3 = vsub.f32 %v40_v0, %v43_v2 }
  0xa9   :  { %v48_v4 = vmul.f32 1.442695, %v46_v3 }
  0xaa   :  { %v45_v5 = vpop.xlane.xlu0 %44 }
  0xab   :  { %97 = vpow2.f32 %v48_v4  ;;  %v47_v6 = vsub.f32 %v41_v1, %v45_v5 }
  0xad   :  { %v50_v7 = vmul.f32 1.442695, %v47_v6 }
  0xaf   :  { %99 = vpow2.f32 %v50_v7 }
  0xb8   :  { %v98_v8 = vpop.eup %97 }
  0xb9   :  { %52 = vadd.xlane.f32.xlu1 %v98_v8 }
  0xbc   :  { %v100_v9 = vpop.eup %99 }
  0xbd   :  { %54 = vadd.xlane.f32.xlu1 %v100_v9 }
 0x142   :  { %v53_v10 = vpop.xlane.xlu1 %52 }
 0x143   :  { %101 = vlog2.f32 %v53_v10 }
 0x146   :  { %v55_v11 = vpop.xlane.xlu1 %54 }
 0x147   :  { %103 = vlog2.f32 %v55_v11 }
 0x150   :  { %v102_v12 = vpop.eup %101 }
 0x151   :  { %v57_v13 = vmul.f32 0.6931472, %v102_v12 }
 0x153   :  { %v60_v14 = vadd.f32 %v57_v13, %v43_v2 }
 0x154   :  { %v104_v15 = vpop.eup %103 }
 0x155   :  { %v59_v16 = vmul.f32 0.6931472, %v104_v15  ;;  %v62_v17 = vsub.f32 %v60_v14, %v40_v0 }
 0x157   :  { %v61_v18 = vadd.f32 %v59_v16, %v45_v5  ;;  %v66_v22 = vmul.f32 %v64_v19, %v62_v17 }
 0x159   :  { %v63_v21 = vsub.f32 %v61_v18, %v41_v1 }
 0x15b   :  { %v67_v23 = vmul.f32 %v65_v20, %v63_v21 }
 0x15d   :  { %v68_v24 = vadd.f32 %v67_v23, %v66_v22 }
 0x15f   :  { %v69_v25 = vrot.slane %v68_v24, 4 }
 0x161   :  { %v70_v26 = vadd.f32 %v69_v25, %v68_v24 }
 0x163   :  { %v71_v27 = vrot.slane %v70_v26, 2 }
 0x165   :  { %v72_v28 = vadd.f32 %v71_v27, %v70_v26 }
 0x167   :  { %v73_v29 = vrot.slane %v72_v28, 1 }
 0x169   :  { %v74_v30 = vadd.f32 %v73_v29, %v72_v28 }
 0x16b   :  { %75 = vst [vmem:[#allocation7] sm:$0x1] %v74_v30 }
 0x16c   :  { %156 = shalt.err (!%p153_p0)
}
 0x16d   :  { %85 = dma.vmem_to_hbm [thread:$0]  %s83_s1, 16, %s202_s2, [#allocation4]  }
 0x16e   :  { %169 = dma.done.wait [#allocation4], 16  }
 0x16f   :  { %170 = vsyncadd [#allocation4], 4294967280 }
 0x170   :  { %89 = vsyncpa [#allocation3], 1 }
 0x171   :  { %90 = vsyncpa [#allocation6], 1 }
 0x172   :  { %91 = vsyncpa [#allocation4], 1 }

</bundles_post_ra>
